<compile_context>
chip_gen: v6e
topology: v6e:2x2x1
jax: 0.10.0
libtpu: 0.0.40
codegen_flags: <defaults>
</compile_context>

<pallas_src>
import math

import jax
import jax.numpy as jnp
from jax.experimental import pallas as pl
from jax.experimental.pallas import tpu as pltpu


def _round_up(x, m):
    return ((x + m - 1) // m) * m


def _mha_edge_kernel(src_ref, dst_ref, dstrow_ref, e_ref,
                     q_ref, kv_ref, we_ref, be_ref, r_ref, rt_ref,
                     hout_ref, eout_ref,
                     acc_ref, iota_e_ref, iota_n_ref):
    i = pl.program_id(0)
    N, HD = hout_ref.shape
    H = r_ref.shape[1]
    D = HD // H

    # ---- step 0: zero the fused [wV | z] accumulator and build the loop-invariant iotas.
    @pl.when(i == 0)
    def _init():
        acc_ref[...] = jnp.zeros_like(acc_ref)
        iota_e_ref[...] = jax.lax.broadcasted_iota(jnp.int32, iota_e_ref.shape, 1)  # (TE, N)
        iota_n_ref[...] = jax.lax.broadcasted_iota(jnp.int32, iota_n_ref.shape, 0)  # (N, TE)

    # ---- edge-feature projection for this tile (kept f32: feeds e_out directly).
    pe = jnp.dot(e_ref[...].astype(jnp.float32), we_ref[...],
                 preferred_element_type=jnp.float32) + be_ref[...]              # (TE, HD)

    # ---- one-hot gather matrices in bf16 (0/1 exact); padded edges carry index == N
    #      -> all-zero one-hot rows -> zero contribution.
    src = src_ref[...]                                                           # (TE, 1) int32
    dst = dst_ref[...]                                                           # (TE, 1) int32
    node_iota = iota_e_ref[...]                                                  # (TE, N)
    onehot_src = (src == node_iota).astype(jnp.bfloat16)                         # (TE, N)
    onehot_dst = (dst == node_iota).astype(jnp.bfloat16)                         # (TE, N)

    # Fused K|V gather (one wide matmul) + Q gather, f32 accumulation on the MXU.
    kv_g = jnp.dot(onehot_src, kv_ref[...], preferred_element_type=jnp.float32)  # (TE, 2*HD)
    q_g = jnp.dot(onehot_dst, q_ref[...], preferred_element_type=jnp.float32)    # (TE, HD)
    k_g = kv_g[:, :HD]
    v_g = kv_g[:, HD:]

    # ---- edge scores (src_dot_dst -> scaling -> imp_exp_attn -> out_edge_features), f32.
    inv_scale = jnp.float32(1.0 / math.sqrt(D))
    score = k_g * q_g * inv_scale * pe                                           # (TE, HD)
    eout_ref[...] = score.astype(eout_ref.dtype)

    # ---- per-head reduce over D (block-diagonal R on the MXU, stays lane-dense), then EUP exp.
    s = jnp.dot(score, r_ref[...], preferred_element_type=jnp.float32)           # (TE, H)
    s = jnp.exp(jnp.clip(s, -5.0, 5.0))
    # Explicitly zero padded edges (src/dst == N) so s is safe to reuse in the fused scatter.
    valid = (src < jnp.int32(N)).astype(jnp.float32)                             # (TE, 1)
    s = s * valid

    s_b = jnp.dot(s, rt_ref[...], preferred_element_type=jnp.float32)            # (TE, HD)
    sv_aug = jnp.concatenate([v_g * s_b, s], axis=1).astype(jnp.bfloat16)        # (TE, HD+H)

    # ---- fused scatter-add of [wV | z] to destination nodes (one matmul over the one-hot).
    onehot_dst_t = (dstrow_ref[...] == iota_n_ref[...]).astype(jnp.bfloat16)     # (N, TE)
    acc_ref[...] += jnp.dot(onehot_dst_t, sv_aug, preferred_element_type=jnp.float32)

    # ---- finalize node output on the last edge tile.
    @pl.when(i == pl.num_programs(0) - 1)
    def _finalize():
        a = acc_ref[...]
        wv = a[:, :HD]                                                            # (N, HD)
        z = a[:, HD:]                                                             # (N, H)
        z_b = jnp.dot(z, rt_ref[...], preferred_element_type=jnp.float32)         # (N, HD)
        hout_ref[...] = (wv / (z_b + jnp.float32(1e-6))).astype(hout_ref.dtype)


def _tile_bytes(rows, cols, itemsize):
    # (8, 128) layout padding.
    return _round_up(max(rows, 1), 8) * _round_up(max(cols, 1), 128) * itemsize


def _estimate_vmem_bytes(N, in_dim, HD, H, TE):
    b = 0
    # per-edge-tile arrays (double-buffered by the pipeline)
    b += 2 * (2 * _tile_bytes(TE, 1, 4) + _tile_bytes(1, TE, 4)
              + _tile_bytes(TE, in_dim, 4) + _tile_bytes(TE, HD, 4))
    # resident inputs/outputs (worst case double-buffered)
    b += 2 * (_tile_bytes(N, HD, 2) + _tile_bytes(N, 2 * HD, 2)
              + _tile_bytes(in_dim, HD, 4) + _tile_bytes(1, HD, 4)
              + _tile_bytes(HD, H, 4) + _tile_bytes(H, HD, 4)
              + _tile_bytes(N, HD, 4))
    # scratch
    b += _tile_bytes(N, HD + H, 4) + _tile_bytes(TE, N, 4) + _tile_bytes(N, TE, 4)
    # transient one-hots / gather intermediates
    b += 3 * _tile_bytes(TE, N, 2) + 4 * _tile_bytes(TE, 2 * HD, 4)
    return b


def multi_head_attention_layer_forward(h, e, src, dst, weights, num_heads, out_dim,
                                        *, tile_edges=512, use_pallas=True):
    """Forward pass of MultiHeadAttentionLayer.

    h: (N, in_dim) node features.     e: (E, in_dim) edge features.
    src, dst: (E,) int edge endpoints (edge goes src -> dst; messages aggregate at dst).
    weights: (Wq, bq, Wk, bk, Wv, bv, We, be) with W* of shape (H*D, in_dim) (PyTorch
             nn.Linear layout) and b* of shape (H*D,) (pass zeros for use_bias=False).
    Returns (h_out (N, H, D), e_out (E, H, D)).
    """
    wq, bq, wk, bk, wv, bv, we, be = weights
    N, in_dim = h.shape
    E = e.shape[0]
    H, D = num_heads, out_dim
    HD = H * D

    if not use_pallas:
        return _reference_forward(h, e, src, dst, weights, num_heads, out_dim)

    f32 = jnp.float32
    bf16 = jnp.bfloat16
    h32 = jnp.asarray(h, f32)

    # Node projections done once by XLA; kernel receives resident bf16 tables.
    q_tab = (h32 @ jnp.asarray(wq, f32).T + jnp.asarray(bq, f32)).astype(bf16)       # (N, HD)
    k_tab = h32 @ jnp.asarray(wk, f32).T + jnp.asarray(bk, f32)
    v_tab = h32 @ jnp.asarray(wv, f32).T + jnp.asarray(bv, f32)
    kv_tab = jnp.concatenate([k_tab, v_tab], axis=1).astype(bf16)                     # (N, 2*HD)

    we_t = jnp.asarray(we, f32).T                   # (in_dim, HD)
    be_r = jnp.asarray(be, f32).reshape(1, HD)

    # Loop-invariant block-diagonal per-head reduce (R) / broadcast (R^T) matrices.
    head_of = jnp.arange(HD, dtype=jnp.int32) // D
    r_mat = (head_of[:, None] == jnp.arange(H, dtype=jnp.int32)[None, :]).astype(f32)  # (HD, H)
    rt_mat = jnp.transpose(r_mat)                                                      # (H, HD)

    # Edge tiling: batch many edges per grid step; when tiled, keep TE a multiple of 128
    # so the (1, TE) row block and the one-hot lane dims stay unmasked.
    if E <= tile_edges:
        TE = _round_up(max(E, 8), 8)
    else:
        TE = _round_up(tile_edges, 128)
    E_pad = _round_up(E, TE)
    pad = E_pad - E

    # Padded edges use the out-of-range node index N -> zero one-hot rows/columns.
    src_p = jnp.concatenate([jnp.asarray(src, jnp.int32), jnp.full((pad,), N, jnp.int32)])
    dst_p = jnp.concatenate([jnp.asarray(dst, jnp.int32), jnp.full((pad,), N, jnp.int32)])
    e_p = jnp.pad(jnp.asarray(e, f32), ((0, pad), (0, 0)))

    src_col = src_p.reshape(E_pad, 1)
    dst_col = dst_p.reshape(E_pad, 1)
    dst_row = dst_p.reshape(1, E_pad)

    grid = (E_pad // TE,)

    est = _estimate_vmem_bytes(N, in_dim, HD, H, TE)
    # Explicit scoped-VMEM budget with headroom (default 16/32 MiB is easily exceeded
    # once N grows). Never request more than ~physical; very large N belongs to the
    # DMA-gather path (see TODO above), especially on v7x (64 MiB).
    vmem_limit = int(max(32 << 20, min(2 * est, 120 << 20)))

    h_out, e_out = pl.pallas_call(
        _mha_edge_kernel,
        out_shape=(jax.ShapeDtypeStruct((N, HD), f32),
                   jax.ShapeDtypeStruct((E_pad, HD), f32)),
        grid_spec=pltpu.PrefetchScalarGridSpec(
            num_scalar_prefetch=0,
            grid=grid,
            in_specs=[
                pl.BlockSpec((TE, 1), lambda i: (i, 0)),          # src (column)
                pl.BlockSpec((TE, 1), lambda i: (i, 0)),          # dst (column)
                pl.BlockSpec((1, TE), lambda i: (0, i)),          # dst (row, scatter one-hot)
                pl.BlockSpec((TE, in_dim), lambda i: (i, 0)),     # e tile
                pl.BlockSpec((N, HD), lambda i: (0, 0)),          # Q table (bf16, resident)
                pl.BlockSpec((N, 2 * HD), lambda i: (0, 0)),      # K|V table (bf16, resident)
                pl.BlockSpec((in_dim, HD), lambda i: (0, 0)),     # We^T (resident)
                pl.BlockSpec((1, HD), lambda i: (0, 0)),          # be
                pl.BlockSpec((HD, H), lambda i: (0, 0)),          # R  (per-head reduce)
                pl.BlockSpec((H, HD), lambda i: (0, 0)),          # R^T (per-head broadcast)
            ],
            out_specs=[
                pl.BlockSpec((N, HD), lambda i: (0, 0)),          # h_out (resident accumulator)
                pl.BlockSpec((TE, HD), lambda i: (i, 0)),         # e_out tile (lane-dense H*D)
            ],
            scratch_shapes=[
                pltpu.VMEM((N, HD + H), f32),      # fused [wV | z] accumulator
                pltpu.VMEM((TE, N), jnp.int32),    # node iota, edge-major (built at step 0)
                pltpu.VMEM((N, TE), jnp.int32),    # node iota, node-major (built at step 0)
            ],
        ),
        # Edge-tile axis carries the [wV | z] accumulation -> must stay "arbitrary".
        compiler_params=pltpu.CompilerParams(
            dimension_semantics=("arbitrary",),
            vmem_limit_bytes=vmem_limit,
        ),
    )(src_col, dst_col, dst_row, e_p, q_tab, kv_tab, we_t, be_r, r_mat, rt_mat)

    return h_out.reshape(N, H, D), e_out[:E].reshape(E, H, D)


def _reference_forward(h, e, src, dst, weights, num_heads, out_dim):
    """Pure-JAX reference of the PyTorch forward."""
    wq, bq, wk, bk, wv, bv, we, be = weights
    f32 = jnp.float32
    h = jnp.asarray(h, f32)
    e = jnp.asarray(e, f32)
    N = h.shape[0]
    H, D = num_heads, out_dim

    Qh = (h @ jnp.asarray(wq, f32).T + bq).reshape(N, H, D)
    Kh = (h @ jnp.asarray(wk, f32).T + bk).reshape(N, H, D)
    Vh = (h @ jnp.asarray(wv, f32).T + bv).reshape(N, H, D)
    pe = (e @ jnp.asarray(we, f32).T + be).reshape(-1, H, D)

    score = Kh[src] * Qh[dst]                   # src_dot_dst
    score = score / jnp.float32(math.sqrt(D))   # scaling
    score = score * pe                          # imp_exp_attn
    e_out = score                               # out_edge_features
    s = jnp.exp(jnp.clip(score.sum(-1, keepdims=True), -5.0, 5.0))    # (E, H, 1)

    wV = jax.ops.segment_sum(Vh[src] * s, dst, num_segments=N)        # (N, H, D)
    z = jax.ops.segment_sum(s, dst, num_segments=N)                   # (N, H, 1)
    h_out = wV / (z + 1e-6)
    return h_out, e_out


if __name__ == "__main__":
    key = jax.random.PRNGKey(0)
    ks = jax.random.split(key, 12)

    N, E, in_dim, num_heads, out_dim = 16, 48, 32, 4, 8
    HD = num_heads * out_dim

    h = jax.random.normal(ks[0], (N, in_dim), jnp.float32)
    e = jax.random.normal(ks[1], (E, in_dim), jnp.float32)
    src = jax.random.randint(ks[2], (E,), 0, N, dtype=jnp.int32)
    dst = jax.random.randint(ks[3], (E,), 0, N, dtype=jnp.int32)

    # nn.Linear(in_dim, out_dim*num_heads, bias=True) parameters (PyTorch layout).
    wq = jax.random.normal(ks[4], (HD, in_dim), jnp.float32) * 0.1
    wk = jax.random.normal(ks[5], (HD, in_dim), jnp.float32) * 0.1
    wv = jax.random.normal(ks[6], (HD, in_dim), jnp.float32) * 0.1
    we = jax.random.normal(ks[7], (HD, in_dim), jnp.float32) * 0.1
    bq = jax.random.normal(ks[8], (HD,), jnp.float32) * 0.1
    bk = jax.random.normal(ks[9], (HD,), jnp.float32) * 0.1
    bv = jax.random.normal(ks[10], (HD,), jnp.float32) * 0.1
    be = jax.random.normal(ks[11], (HD,), jnp.float32) * 0.1
    weights = (wq, bq, wk, bk, wv, bv, we, be)

    h_out, e_out = multi_head_attention_layer_forward(
        h, e, src, dst, weights, num_heads, out_dim, use_pallas=True)
    h_out, e_out = jax.block_until_ready((h_out, e_out))

    h_ref, e_ref = _reference_forward(h, e, src, dst, weights, num_heads, out_dim)

    assert h_out.shape == (N, num_heads, out_dim)
    assert e_out.shape == (E, num_heads, out_dim)
    # Tolerance covers bf16 node-table rounding + MXU accumulation vs the f32 XLA reference.
    assert jnp.allclose(e_out, e_ref, atol=2e-2, rtol=2e-2), "e_out mismatch vs reference"
    assert jnp.allclose(h_out, h_ref, atol=2e-2, rtol=2e-2), "h_out mismatch vs reference"

    print("KERNEL_OK")
</pallas_src>

<mosaic_0001>
module attributes {stable_mosaic.version = 11 : i64} {
  func.func @_mha_edge_kernel(%arg0: i32, %arg1: memref<48x1xi32, #tpu.memory_space<vmem>>, %arg2: memref<48x1xi32, #tpu.memory_space<vmem>>, %arg3: memref<1x48xi32, #tpu.memory_space<vmem>>, %arg4: memref<48x32xf32, #tpu.memory_space<vmem>>, %arg5: memref<16x32xbf16, #tpu.memory_space<vmem>>, %arg6: memref<16x64xbf16, #tpu.memory_space<vmem>>, %arg7: memref<32x32xf32, #tpu.memory_space<vmem>>, %arg8: memref<1x32xf32, #tpu.memory_space<vmem>>, %arg9: memref<32x4xf32, #tpu.memory_space<vmem>>, %arg10: memref<4x32xf32, #tpu.memory_space<vmem>>, %arg11: memref<16x32xf32, #tpu.memory_space<vmem>>, %arg12: memref<48x32xf32, #tpu.memory_space<vmem>>, %arg13: memref<16x36xf32, #tpu.memory_space<vmem>>, %arg14: memref<48x16xi32, #tpu.memory_space<vmem>>, %arg15: memref<16x48xi32, #tpu.memory_space<vmem>>) attributes {dimension_semantics = [#tpu.dimension_semantics<arbitrary>], iteration_bounds = array<i64: 1>, scalar_prefetch = 0 : i64, scratch_operands = 3 : i64, tpu.core_type = #tpu.core_type<tc>, window_params = [{transform_indices = @transform_0, window_bounds = array<i64: 48, 1>}, {transform_indices = @transform_1, window_bounds = array<i64: 48, 1>}, {transform_indices = @transform_2, window_bounds = array<i64: 1, 48>}, {transform_indices = @transform_3, window_bounds = array<i64: 48, 32>}, {pipeline_mode = #tpu.pipeline_mode<synchronous>, transform_indices = @transform_4, window_bounds = array<i64: 16, 32>}, {pipeline_mode = #tpu.pipeline_mode<synchronous>, transform_indices = @transform_5, window_bounds = array<i64: 16, 64>}, {pipeline_mode = #tpu.pipeline_mode<synchronous>, transform_indices = @transform_6, window_bounds = array<i64: 32, 32>}, {pipeline_mode = #tpu.pipeline_mode<synchronous>, transform_indices = @transform_7, window_bounds = array<i64: 1, 32>}, {pipeline_mode = #tpu.pipeline_mode<synchronous>, transform_indices = @transform_8, window_bounds = array<i64: 32, 4>}, {pipeline_mode = #tpu.pipeline_mode<synchronous>, transform_indices = @transform_9, window_bounds = array<i64: 4, 32>}, {pipeline_mode = #tpu.pipeline_mode<synchronous>, transform_indices = @transform_10, window_bounds = array<i64: 16, 32>}, {transform_indices = @transform_11, window_bounds = array<i64: 48, 32>}]} {
    %c0_i32 = arith.constant 0 : i32
    %0 = arith.cmpi eq, %arg0, %c0_i32 : i32
    %1 = arith.extui %0 : i1 to i32
    %c0_i32_0 = arith.constant 0 : i32
    %2 = arith.cmpi ne, %1, %c0_i32_0 : i32
    scf.if %2 {
      %cst_40 = arith.constant 0.000000e+00 : f32
      %65 = vector.broadcast %cst_40 : f32 to vector<16x36xf32>
      %c0_41 = arith.constant 0 : index
      %c0_42 = arith.constant 0 : index
      %66 = vector.load %arg13[%c0_41, %c0_42] : memref<16x36xf32, #tpu.memory_space<vmem>>, vector<16x36xf32>
      tpu.vector_store %arg13[%c0_41, %c0_42], %65 {strides = array<i32>} : memref<16x36xf32, #tpu.memory_space<vmem>>, vector<16x36xf32>,
      %67 = tpu.iota {dimensions = array<i32: 1>} : vector<48x16xi32>
      %c0_43 = arith.constant 0 : index
      %c0_44 = arith.constant 0 : index
      %68 = vector.load %arg14[%c0_43, %c0_44] : memref<48x16xi32, #tpu.memory_space<vmem>>, vector<48x16xi32>
      tpu.vector_store %arg14[%c0_43, %c0_44], %67 {strides = array<i32>} : memref<48x16xi32, #tpu.memory_space<vmem>>, vector<48x16xi32>,
      %69 = tpu.iota {dimensions = array<i32: 0>} : vector<16x48xi32>
      %c0_45 = arith.constant 0 : index
      %c0_46 = arith.constant 0 : index
      %70 = vector.load %arg15[%c0_45, %c0_46] : memref<16x48xi32, #tpu.memory_space<vmem>>, vector<16x48xi32>
      tpu.vector_store %arg15[%c0_45, %c0_46], %69 {strides = array<i32>} : memref<16x48xi32, #tpu.memory_space<vmem>>, vector<16x48xi32>,
    } else {
    }
    %c0 = arith.constant 0 : index
    %c0_1 = arith.constant 0 : index
    %3 = vector.load %arg4[%c0, %c0_1] : memref<48x32xf32, #tpu.memory_space<vmem>>, vector<48x32xf32>
    %c0_2 = arith.constant 0 : index
    %c0_3 = arith.constant 0 : index
    %4 = vector.load %arg7[%c0_2, %c0_3] : memref<32x32xf32, #tpu.memory_space<vmem>>, vector<32x32xf32>
    %cst = arith.constant dense<0.000000e+00> : vector<48x32xf32>
    %5 = tpu.matmul %3, %4, %cst {dimension_numbers = #tpu.dot_dimension_numbers<[1], [0], [0], [1], [0, 0, 1, 1], [], []>} : vector<48x32xf32>, vector<32x32xf32>, vector<48x32xf32> -> vector<48x32xf32>
    %c0_4 = arith.constant 0 : index
    %c0_5 = arith.constant 0 : index
    %6 = vector.load %arg8[%c0_4, %c0_5] : memref<1x32xf32, #tpu.memory_space<vmem>>, vector<1x32xf32>
    %7 = vector.broadcast %6 : vector<1x32xf32> to vector<48x32xf32>
    %8 = arith.addf %5, %7 : vector<48x32xf32>
    %c0_6 = arith.constant 0 : index
    %c0_7 = arith.constant 0 : index
    %9 = vector.load %arg1[%c0_6, %c0_7] : memref<48x1xi32, #tpu.memory_space<vmem>>, vector<48x1xi32>
    %c0_8 = arith.constant 0 : index
    %c0_9 = arith.constant 0 : index
    %10 = vector.load %arg2[%c0_8, %c0_9] : memref<48x1xi32, #tpu.memory_space<vmem>>, vector<48x1xi32>
    %c0_10 = arith.constant 0 : index
    %c0_11 = arith.constant 0 : index
    %11 = vector.load %arg14[%c0_10, %c0_11] : memref<48x16xi32, #tpu.memory_space<vmem>>, vector<48x16xi32>
    %12 = vector.broadcast %9 : vector<48x1xi32> to vector<48x16xi32>
    %13 = arith.cmpi eq, %12, %11 : vector<48x16xi32>
    %14 = arith.extui %13 : vector<48x16xi1> to vector<48x16xi32>
    %15 = arith.sitofp %14 : vector<48x16xi32> to vector<48x16xf32>
    %16 = arith.truncf %15 : vector<48x16xf32> to vector<48x16xbf16>
    %17 = vector.broadcast %10 : vector<48x1xi32> to vector<48x16xi32>
    %18 = arith.cmpi eq, %17, %11 : vector<48x16xi32>
    %19 = arith.extui %18 : vector<48x16xi1> to vector<48x16xi32>
    %20 = arith.sitofp %19 : vector<48x16xi32> to vector<48x16xf32>
    %21 = arith.truncf %20 : vector<48x16xf32> to vector<48x16xbf16>
    %c0_12 = arith.constant 0 : index
    %c0_13 = arith.constant 0 : index
    %22 = vector.load %arg6[%c0_12, %c0_13] : memref<16x64xbf16, #tpu.memory_space<vmem>>, vector<16x64xbf16>
    %cst_14 = arith.constant dense<0.000000e+00> : vector<48x64xf32>
    %23 = tpu.matmul %16, %22, %cst_14 {dimension_numbers = #tpu.dot_dimension_numbers<[1], [0], [0], [1], [0, 0, 1, 1], [], []>} : vector<48x16xbf16>, vector<16x64xbf16>, vector<48x64xf32> -> vector<48x64xf32>
    %c0_15 = arith.constant 0 : index
    %c0_16 = arith.constant 0 : index
    %24 = vector.load %arg5[%c0_15, %c0_16] : memref<16x32xbf16, #tpu.memory_space<vmem>>, vector<16x32xbf16>
    %cst_17 = arith.constant dense<0.000000e+00> : vector<48x32xf32>
    %25 = tpu.matmul %21, %24, %cst_17 {dimension_numbers = #tpu.dot_dimension_numbers<[1], [0], [0], [1], [0, 0, 1, 1], [], []>} : vector<48x16xbf16>, vector<16x32xbf16>, vector<48x32xf32> -> vector<48x32xf32>
    %26 = vector.extract_strided_slice %23 {offsets = [0, 0], sizes = [48, 32], strides = [1, 1]} : vector<48x64xf32> to vector<48x32xf32>
    %27 = vector.extract_strided_slice %23 {offsets = [0, 32], sizes = [48, 32], strides = [1, 1]} : vector<48x64xf32> to vector<48x32xf32>
    %28 = arith.mulf %26, %25 : vector<48x32xf32>
    %cst_18 = arith.constant 0.353553385 : f32
    %29 = vector.broadcast %cst_18 : f32 to vector<48x32xf32>
    %30 = arith.mulf %28, %29 : vector<48x32xf32>
    %31 = arith.mulf %30, %8 : vector<48x32xf32>
    %c0_19 = arith.constant 0 : index
    %c0_20 = arith.constant 0 : index
    %32 = vector.load %arg12[%c0_19, %c0_20] : memref<48x32xf32, #tpu.memory_space<vmem>>, vector<48x32xf32>
    tpu.vector_store %arg12[%c0_19, %c0_20], %31 {strides = array<i32>} : memref<48x32xf32, #tpu.memory_space<vmem>>, vector<48x32xf32>,
    %c0_21 = arith.constant 0 : index
    %c0_22 = arith.constant 0 : index
    %33 = vector.load %arg9[%c0_21, %c0_22] : memref<32x4xf32, #tpu.memory_space<vmem>>, vector<32x4xf32>
    %cst_23 = arith.constant dense<0.000000e+00> : vector<48x4xf32>
    %34 = tpu.matmul %31, %33, %cst_23 {dimension_numbers = #tpu.dot_dimension_numbers<[1], [0], [0], [1], [0, 0, 1, 1], [], []>} : vector<48x32xf32>, vector<32x4xf32>, vector<48x4xf32> -> vector<48x4xf32>
    %cst_24 = arith.constant -5.000000e+00 : f32
    %cst_25 = arith.constant 5.000000e+00 : f32
    %35 = vector.broadcast %cst_24 : f32 to vector<48x4xf32>
    %36 = arith.maximumf %35, %34 : vector<48x4xf32>
    %37 = vector.broadcast %cst_25 : f32 to vector<48x4xf32>
    %38 = arith.minimumf %37, %36 : vector<48x4xf32>
    %39 = math.exp %38 : vector<48x4xf32>
    %c16_i32 = arith.constant 16 : i32
    %40 = vector.broadcast %c16_i32 : i32 to vector<48x1xi32>
    %41 = arith.cmpi slt, %9, %40 : vector<48x1xi32>
    %42 = arith.extui %41 : vector<48x1xi1> to vector<48x1xi32>
    %43 = arith.sitofp %42 : vector<48x1xi32> to vector<48x1xf32>
    %44 = vector.broadcast %43 : vector<48x1xf32> to vector<48x4xf32>
    %45 = arith.mulf %39, %44 : vector<48x4xf32>
    %c0_26 = arith.constant 0 : index
    %c0_27 = arith.constant 0 : index
    %46 = vector.load %arg10[%c0_26, %c0_27] : memref<4x32xf32, #tpu.memory_space<vmem>>, vector<4x32xf32>
    %cst_28 = arith.constant dense<0.000000e+00> : vector<48x32xf32>
    %47 = tpu.matmul %45, %46, %cst_28 {dimension_numbers = #tpu.dot_dimension_numbers<[1], [0], [0], [1], [0, 0, 1, 1], [], []>} : vector<48x4xf32>, vector<4x32xf32>, vector<48x32xf32> -> vector<48x32xf32>
    %48 = arith.mulf %27, %47 : vector<48x32xf32>
    %49 = tpu.concatenate %48, %45 in 1 : vector<48x32xf32>, vector<48x4xf32> -> vector<48x36xf32>
    %50 = arith.truncf %49 : vector<48x36xf32> to vector<48x36xbf16>
    %c0_29 = arith.constant 0 : index
    %c0_30 = arith.constant 0 : index
    %51 = vector.load %arg3[%c0_29, %c0_30] : memref<1x48xi32, #tpu.memory_space<vmem>>, vector<1x48xi32>
    %c0_31 = arith.constant 0 : index
    %c0_32 = arith.constant 0 : index
    %52 = vector.load %arg15[%c0_31, %c0_32] : memref<16x48xi32, #tpu.memory_space<vmem>>, vector<16x48xi32>
    %53 = vector.broadcast %51 : vector<1x48xi32> to vector<16x48xi32>
    %54 = arith.cmpi eq, %53, %52 : vector<16x48xi32>
    %55 = arith.extui %54 : vector<16x48xi1> to vector<16x48xi32>
    %56 = arith.sitofp %55 : vector<16x48xi32> to vector<16x48xf32>
    %57 = arith.truncf %56 : vector<16x48xf32> to vector<16x48xbf16>
    %c0_33 = arith.constant 0 : index
    %c0_34 = arith.constant 0 : index
    %58 = vector.load %arg13[%c0_33, %c0_34] : memref<16x36xf32, #tpu.memory_space<vmem>>, vector<16x36xf32>
    %cst_35 = arith.constant dense<0.000000e+00> : vector<16x36xf32>
    %59 = tpu.matmul %57, %50, %cst_35 {dimension_numbers = #tpu.dot_dimension_numbers<[1], [0], [0], [1], [0, 0, 1, 1], [], []>} : vector<16x48xbf16>, vector<48x36xbf16>, vector<16x36xf32> -> vector<16x36xf32>
    %60 = arith.addf %58, %59 : vector<16x36xf32>
    %c0_36 = arith.constant 0 : index
    %c0_37 = arith.constant 0 : index
    %61 = vector.load %arg13[%c0_36, %c0_37] : memref<16x36xf32, #tpu.memory_space<vmem>>, vector<16x36xf32>
    tpu.vector_store %arg13[%c0_36, %c0_37], %60 {strides = array<i32>} : memref<16x36xf32, #tpu.memory_space<vmem>>, vector<16x36xf32>,
    %c0_i32_38 = arith.constant 0 : i32
    %62 = arith.cmpi eq, %arg0, %c0_i32_38 : i32
    %63 = arith.extui %62 : i1 to i32
    %c0_i32_39 = arith.constant 0 : i32
    %64 = arith.cmpi ne, %63, %c0_i32_39 : i32
    scf.if %64 {
      %c0_40 = arith.constant 0 : index
      %c0_41 = arith.constant 0 : index
      %65 = vector.load %arg13[%c0_40, %c0_41] : memref<16x36xf32, #tpu.memory_space<vmem>>, vector<16x36xf32>
      %66 = vector.extract_strided_slice %65 {offsets = [0, 0], sizes = [16, 32], strides = [1, 1]} : vector<16x36xf32> to vector<16x32xf32>
      %67 = vector.extract_strided_slice %65 {offsets = [0, 32], sizes = [16, 4], strides = [1, 1]} : vector<16x36xf32> to vector<16x4xf32>
      %c0_42 = arith.constant 0 : index
      %c0_43 = arith.constant 0 : index
      %68 = vector.load %arg10[%c0_42, %c0_43] : memref<4x32xf32, #tpu.memory_space<vmem>>, vector<4x32xf32>
      %cst_44 = arith.constant dense<0.000000e+00> : vector<16x32xf32>
      %69 = tpu.matmul %67, %68, %cst_44 {dimension_numbers = #tpu.dot_dimension_numbers<[1], [0], [0], [1], [0, 0, 1, 1], [], []>} : vector<16x4xf32>, vector<4x32xf32>, vector<16x32xf32> -> vector<16x32xf32>
      %cst_45 = arith.constant 9.99999997E-7 : f32
      %70 = vector.broadcast %cst_45 : f32 to vector<16x32xf32>
      %71 = arith.addf %69, %70 : vector<16x32xf32>
      %72 = arith.divf %66, %71 : vector<16x32xf32>
      %c0_46 = arith.constant 0 : index
      %c0_47 = arith.constant 0 : index
      %73 = vector.load %arg11[%c0_46, %c0_47] : memref<16x32xf32, #tpu.memory_space<vmem>>, vector<16x32xf32>
      tpu.vector_store %arg11[%c0_46, %c0_47], %72 {strides = array<i32>} : memref<16x32xf32, #tpu.memory_space<vmem>>, vector<16x32xf32>,
    } else {
    }
    return
  }
  func.func @transform_0(%arg0: i32) -> (i32, i32) {
    %c0_i32 = arith.constant 0 : i32
    %c0_i32_0 = arith.constant 0 : i32
    return %arg0, %c0_i32 : i32, i32
  }
  func.func @transform_1(%arg0: i32) -> (i32, i32) {
    %c0_i32 = arith.constant 0 : i32
    %c0_i32_0 = arith.constant 0 : i32
    return %arg0, %c0_i32 : i32, i32
  }
  func.func @transform_2(%arg0: i32) -> (i32, i32) {
    %c0_i32 = arith.constant 0 : i32
    %c0_i32_0 = arith.constant 0 : i32
    return %c0_i32, %arg0 : i32, i32
  }
  func.func @transform_3(%arg0: i32) -> (i32, i32) {
    %c0_i32 = arith.constant 0 : i32
    %c0_i32_0 = arith.constant 0 : i32
    return %arg0, %c0_i32 : i32, i32
  }
  func.func @transform_4(%arg0: i32) -> (i32, i32) {
    %c0_i32 = arith.constant 0 : i32
    %c0_i32_0 = arith.constant 0 : i32
    %c0_i32_1 = arith.constant 0 : i32
    return %c0_i32, %c0_i32_0 : i32, i32
  }
  func.func @transform_5(%arg0: i32) -> (i32, i32) {
    %c0_i32 = arith.constant 0 : i32
    %c0_i32_0 = arith.constant 0 : i32
    %c0_i32_1 = arith.constant 0 : i32
    return %c0_i32, %c0_i32_0 : i32, i32
  }
  func.func @transform_6(%arg0: i32) -> (i32, i32) {
    %c0_i32 = arith.constant 0 : i32
    %c0_i32_0 = arith.constant 0 : i32
    %c0_i32_1 = arith.constant 0 : i32
    return %c0_i32, %c0_i32_0 : i32, i32
  }
  func.func @transform_7(%arg0: i32) -> (i32, i32) {
    %c0_i32 = arith.constant 0 : i32
    %c0_i32_0 = arith.constant 0 : i32
    %c0_i32_1 = arith.constant 0 : i32
    return %c0_i32, %c0_i32_0 : i32, i32
  }
  func.func @transform_8(%arg0: i32) -> (i32, i32) {
    %c0_i32 = arith.constant 0 : i32
    %c0_i32_0 = arith.constant 0 : i32
    %c0_i32_1 = arith.constant 0 : i32
    return %c0_i32, %c0_i32_0 : i32, i32
  }
  func.func @transform_9(%arg0: i32) -> (i32, i32) {
    %c0_i32 = arith.constant 0 : i32
    %c0_i32_0 = arith.constant 0 : i32
    %c0_i32_1 = arith.constant 0 : i32
    return %c0_i32, %c0_i32_0 : i32, i32
  }
  func.func @transform_10(%arg0: i32) -> (i32, i32) {
    %c0_i32 = arith.constant 0 : i32
    %c0_i32_0 = arith.constant 0 : i32
    %c0_i32_1 = arith.constant 0 : i32
    return %c0_i32, %c0_i32_0 : i32, i32
  }
  func.func @transform_11(%arg0: i32) -> (i32, i32) {
    %c0_i32 = arith.constant 0 : i32
    %c0_i32_0 = arith.constant 0 : i32
    return %arg0, %c0_i32 : i32, i32
  }
}

</mosaic_0001>

<bundles_post_ra>
// kernel: tpu_custom_call.1
= control target key start
LH: loop header
LB: loop body
LE: loop exit
PB: predicated region body
PF: predicated region fallthrough
CT: control target
= control target key end

     0   :  { %v1326_v2 = vmov 0   ;;  %v46_v3 = vlaneseq  ;;  %v1327_v6 = vmov 0.0   ;;  %vm78_vm0 = vcmask 261120   ;;  %s1644_s0 = inlined_call_operand.vmem [shape: s32[48,1], index: 0, kind: input, shape index: {}]   ;;  %s1645_s1 = inlined_call_operand.vmem [shape: s32[48,1], index: 1, kind: input, shape index: {}]   ;;  %s1646_s2 = inlined_call_operand.vmem [shape: s32[1,48], index: 2, kind: input, shape index: {}]   ;;  %s1647_s3 = inlined_call_operand.vmem [shape: f32[48,32], index: 3, kind: input, shape index: {}]   ;;  %s1648_s4 = inlined_call_operand.vmem [shape: bf16[16,32], index: 4, kind: input, shape index: {}]   ;;  %s1649_s5 = inlined_call_operand.vmem [shape: bf16[16,64], index: 5, kind: input, shape index: {}]   ;;  %s1650_s6 = inlined_call_operand.vmem [shape: f32[32,32], index: 6, kind: input, shape index: {}]   ;;  %s1651_s7 = inlined_call_operand.vmem [shape: f32[1,32], index: 7, kind: input, shape index: {}]   ;;  %s1652_s8 = inlined_call_operand.vmem [shape: f32[32,4], index: 8, kind: input, shape index: {}]   ;;  %s1653_s9 = inlined_call_operand.vmem [shape: f32[4,32], index: 9, kind: input, shape index: {}]   ;;  %s1654_s10 = inlined_call_operand.hbm [shape: f32[16,32], index: 10, kind: output, shape index: {0}]   ;;  %s1655_s11 = inlined_call_operand.vmem [shape: f32[48,32], index: 11, kind: output, shape index: {1}]  }
   0x1   :  { %v198_v0 = vld [vmem:[%s1645_s1] sm:$0xff]  ;;  %1240 = vset.pattern.permute.xlu1 %v1326_v2  ;;  %1239 = vset.pattern.permute.xlu0 %v1326_v2  ;;  %v199_v4 = vld [vmem:[%s1645_s1 + $0x8] sm:$0xff]  ;;  %v70_v7 = vld [vmem:[%s1650_s6 + $0x18] sm:$0xff]  ;;  %vm48_vm1 = vcmask 130048   ;;  %vm1328_vm2 = vmmov 0  }
   0x2   :  { %v1400_v1 = vld [vmem:[%s1644_s0] sm:$0xff]  ;;  %250 = vperm.xlu1 %1240, %v198_v0   ;;  %v193_v5 = vld [vmem:[%s1644_s0 + $0x8] sm:$0xff]  ;;  %1160 = vmatprep.subr.bf16.mxu1 %v1327_v6  ;;  %v69_v8 = vld [vmem:[%s1650_s6 + $0x10] sm:$0xff]  ;;  %v47_v10 = vand.u32 127, %v46_v3 }
   0x3   :  { %211 = vperm.xlu0 %1239, %v1400_v1   ;;  %1143 = vmatprep.subr.mxu0 %v70_v7  ;;  %v61_v9 = vld [vmem:[%s1647_s3] sm:$0xff]  ;;  %v195_v11 = vld [vmem:[%s1644_s0 + $0x18] sm:$0xff]  ;;  %v194_v12 = vld [vmem:[%s1644_s0 + $0x10] sm:$0xff] }
   0x4   :  { %1144 = vmatpush3.msra.mxu0 %v70_v7  ;;  %v68_v13 = vld [vmem:[%s1650_s6 + $0x8] sm:$0xff]  ;;  %1151 = vmatprep.mubr.msk.f32.mxu0 %vm78_vm0, %v61_v9  ;;  %49 = vst.msk [vmem:[#allocation3] sm:$0xff] %vm48_vm1, %v47_v10  ;;  %50 = vst.msk [vmem:[#allocation3 + $0x8] sm:$0xff] %vm48_vm1, %v47_v10  ;;  %v1286_v14 = vld [vmem:[%s1649_s5] sm:$0xff]  }
   0x5   :  { %51 = vst.msk [vmem:[#allocation3 + $0x10] sm:$0xff] %vm48_vm1, %v47_v10  ;;  %52 = vst.msk [vmem:[#allocation3 + $0x18] sm:$0xff] %vm48_vm1, %v47_v10  ;;  %1145 = vmatprep.subr.mxu0 %v69_v8  ;;  %1162 = vmatprep.mubr.msk.bf16.mxu1 %vm1328_vm2, %v1327_v6 }
   0x6   :  { %253 = vperm.xlu1 %1240, %v199_v4   ;;  %53 = vst.msk [vmem:[#allocation3 + $0x20] sm:$0xff] %vm48_vm1, %v47_v10  ;;  %54 = vst.msk [vmem:[#allocation3 + $0x28] sm:$0xff] %vm48_vm1, %v47_v10  ;;  %1146 = vmatpush3.msra.mxu0 %v69_v8 }
   0x7   :  { %214 = vperm.xlu0 %1239, %v193_v5  }
   0x8   :  { %17 = vsyncpa [#allocation6], 0  ;;  %v67_v15 = vld [vmem:[%s1650_s6] sm:$0xff]  ;;  %v201_v16 = vld [vmem:[%s1645_s1 + $0x18] sm:$0xff]  ;;  %1147 = vmatprep.subr.mxu0 %v68_v13  ;;  %1161 = vmatpush3.bf16.msra.mxu1 %v1286_v14  ;;  %vm602_vm3 = vcmp.lt.s32.totalorder %v1400_v1, 16  ;;  %vm603_vm4 = vcmp.lt.s32.totalorder %v193_v5, 16 }
   0x9   :  { %v200_v17 = vld [vmem:[%s1645_s1 + $0x10] sm:$0xff]  ;;  %1148 = vmatpush3.msra.mxu0 %v68_v13  ;;  %v62_v18 = vld [vmem:[%s1647_s3 + $0x8] sm:$0xff]  ;;  %v1287_v19 = vld [vmem:[%s1648_s4] sm:$0xff]   ;;  %vm605_vm5 = vcmp.lt.s32.totalorder %v195_v11, 16  ;;  %vm604_vm6 = vcmp.lt.s32.totalorder %v194_v12, 16  ;;  %v1081_v25 = vsel %vm602_vm3, 1.0, %v1327_v6 }
   0xa   :  { %220 = vperm.xlu1 %1240, %v195_v11   ;;  %1149 = vmatprep.subr.mxu0 %v67_v15  ;;  %v63_v20 = vld [vmem:[%s1647_s3 + $0x10] sm:$0xff]  ;;  %v197_v21 = vld [vmem:[%s1644_s0 + $0x28] sm:$0xff]  ;;  %v196_v22 = vld [vmem:[%s1644_s0 + $0x20] sm:$0xff]  ;;  %v1082_v26 = vsel %vm603_vm4, 1.0, %v1327_v6  ;;  %v1084_v27 = vsel %vm605_vm5, 1.0, %v1327_v6  ;;  %v1083_v28 = vsel %vm604_vm6, 1.0, %v1327_v6 }
   0xb   :  { %217 = vperm.xlu0 %1239, %v194_v12   ;;  %1150 = vmatpush3.msra.mxu0 %v67_v15  ;;  %v64_v23 = vld [vmem:[%s1647_s3 + $0x18] sm:$0xff]  ;;  %v65_v24 = vld [vmem:[%s1647_s3 + $0x20] sm:$0xff]  ;;  %v203_v29 = vld [vmem:[%s1645_s1 + $0x28] sm:$0xff]  ;;  %vm607_vm7 = vcmp.lt.s32.totalorder %v197_v21, 16  ;;  %vm606_vm8 = vcmp.lt.s32.totalorder %v196_v22, 16  ;;  %v1246_v32 = vpack.i.bf16 %v1084_v27, %v1083_v28  ;;  %v1241_v33 = vpack.i.bf16 %v1082_v26, %v1081_v25  ;;  %s1330_s20 = smov 96  }
   0xc   :  { %1152 = vmatmul.mubr.msk.f32.vlgmr.msra.gmra.mxu0 %vm78_vm0, %v62_v18  ;;  %1174 = vmatprep.subr.bf16.mxu0 %v1327_v6  ;;  %v202_v30 = vld [vmem:[%s1645_s1 + $0x20] sm:$0xff]  ;;  %v66_v31 = vld [vmem:[%s1647_s3 + $0x28] sm:$0xff]  ;;  %v1086_v34 = vsel %vm607_vm7, 1.0, %v1327_v6  ;;  %v1085_v35 = vsel %vm606_vm8, 1.0, %v1327_v6  ;;  %v204_v38 = vld [vmem:[#allocation3] sm:$0xff]  ;;  %vm58_vm8 = vcmask 392192  }
   0xd   :  { %1154 = vmatprep.mubr.msk.f32.mxu0 %vm78_vm0, %v63_v20  ;;  %1175 = vmatpush3.bf16.msra.mxu0 %v1287_v19  ;;  %v1251_v36 = vpack.i.bf16 %v1086_v34, %v1085_v35  ;;  %v205_v40 = vld [vmem:[#allocation3 + $0x8] sm:$0xff]  ;;  %v207_v47 = vld [vmem:[#allocation3 + $0x18] sm:$0xff]  ;;  %v206_v48 = vld [vmem:[#allocation3 + $0x10] sm:$0xff] }
   0xe   :  { %259 = vperm.xlu1 %1240, %v201_v16   ;;  %1216 = vmatprep.subr.bf16.mxu0 %v1327_v6  ;;  %v209_v59 = vld [vmem:[#allocation3 + $0x28] sm:$0xff]  ;;  %v208_v60 = vld [vmem:[#allocation3 + $0x20] sm:$0xff]  ;;  %v462_v13 = vld [vmem:[%s1652_s8 + $0x8] sm:$0xff] }
   0xf   :  { %256 = vperm.xlu0 %1239, %v200_v17   ;;  %v464_v11 = vld [vmem:[%s1652_s8 + $0x18] sm:$0xff]  ;;  %v463_v12 = vld [vmem:[%s1652_s8 + $0x10] sm:$0xff]  ;;  %v461_v14 = vld [vmem:[%s1652_s8] sm:$0xff] }
  0x10   :  { %1155 = vmatmul.mubr.msk.f32.gmra.mxu0 %vm78_vm0, %v64_v23  ;;  %1188 = vmatprep.subr.mxu1 %v464_v11 }
  0x11   :  { %1157 = vmatprep.mubr.msk.f32.mxu0 %vm78_vm0, %v65_v24 }
  0x12   :  { %226 = vperm.xlu1 %1240, %v197_v21   ;;  %v1042_v21 = vld [vmem:[%s1651_s7] ss:$0 sm:$0xff] }
  0x13   :  { %223 = vperm.xlu0 %1239, %v196_v22  }
  0x14   :  { %1158 = vmatmul.mubr.msk.f32.gmra.mxu0 %vm78_vm0, %v66_v31 }
  0x15   :  { %1176 = vmatprep.mubr.msk.bf16.mxu0 %vm1328_vm2, %v1327_v6 }
  0x16   :  { %265 = vperm.xlu1 %1240, %v203_v29  }
  0x17   :  { %262 = vperm.xlu0 %1239, %v202_v30  }
  0x1a   :  { %1247 = vperm.xlu1 %1240, %v1246_v32  }
  0x1b   :  { %1242 = vperm.xlu0 %1239, %v1241_v33  }
  0x1f   :  { %1252 = vperm.xlu0 %1239, %v1251_v36  }
  0x7d   :  { %v251_v37 = vpop.permute.xlu1 %250 }
  0x7e   :  { %v212_v39 = vpop.permute.xlu0 %211  ;;  %vm267_vm9 = vcmp.eq.s32.totalorder %v251_v37, %v204_v38 }
  0x7f   :  { %vm228_vm10 = vcmp.eq.s32.totalorder %v212_v39, %v204_v38  ;;  %v1055_v43 = vsel %vm267_vm9, 1.0, %v1327_v6  ;;  %vm43_vm9 = vcmask 293888  }
  0x80   :  { %v1049_v44 = vsel %vm228_vm10, 1.0, %v1327_v6  ;;  %44 = vst.msk [vmem:[#allocation2] sm:$0xff] %vm43_vm9, %v1327_v6  ;;  %45 = vst.msk [vmem:[#allocation2 + $0x8] sm:$0xff] %vm43_vm9, %v1327_v6 }
  0x81   :  { %v254_v41 = vpop.permute.xlu1 %253 }
  0x82   :  { %v215_v42 = vpop.permute.xlu0 %214  ;;  %vm268_vm11 = vcmp.eq.s32.totalorder %v254_v41, %v205_v40 }
  0x83   :  { %vm229_vm12 = vcmp.eq.s32.totalorder %v215_v42, %v205_v40  ;;  %v1056_v45 = vsel %vm268_vm11, 1.0, %v1327_v6 }
  0x84   :  { %v1050_v46 = vsel %vm229_vm12, 1.0, %v1327_v6  ;;  %v285_v49 = vpack.c.bf16 %v1056_v45, %v1055_v43 }
  0x85   :  { %v246_v50 = vpack.c.bf16 %v1050_v46, %v1049_v44  ;;  %v221_v51 = vpop.permute.xlu1 %220 }
  0x86   :  { %v218_v52 = vpop.permute.xlu0 %217  ;;  %vm231_vm13 = vcmp.eq.s32.totalorder %v221_v51, %v207_v47  ;;  %1177 = vmatmul.mubr.msk.bf16.vlgmr.msra.gmra.mxu0 %vm48_vm1, %v285_v49 }
  0x87   :  { %vm230_vm14 = vcmp.eq.s32.totalorder %v218_v52, %v206_v48  ;;  %1163 = vmatmul.mubr.msk.bf16.vlgmr.msra.gmra.mxu1 %vm48_vm1, %v246_v50  ;;  %1180 = vmatprep.mubr.msk.bf16.mxu0 %vm1328_vm2, %v1327_v6  ;;  %v1052_v53 = vsel %vm231_vm13, 1.0, %v1327_v6 }
  0x88   :  { %1166 = vmatprep.mubr.msk.bf16.mxu1 %vm1328_vm2, %v1327_v6  ;;  %v1051_v54 = vsel %vm230_vm14, 1.0, %v1327_v6  ;;  %1189 = vmatpush3.msra.mxu1 %v464_v11 }
  0x89   :  { %v260_v55 = vpop.permute.xlu1 %259  ;;  %v247_v61 = vpack.c.bf16 %v1052_v53, %v1051_v54  ;;  %1190 = vmatprep.subr.mxu1 %v463_v12 }
  0x8a   :  { %v257_v56 = vpop.permute.xlu0 %256  ;;  %vm270_vm15 = vcmp.eq.s32.totalorder %v260_v55, %v207_v47  ;;  %1191 = vmatpush3.msra.mxu1 %v463_v12 }
  0x8b   :  { %vm269_vm3 = vcmp.eq.s32.totalorder %v257_v56, %v206_v48  ;;  %v1058_v57 = vsel %vm270_vm15, 1.0, %v1327_v6  ;;  %1192 = vmatprep.subr.mxu1 %v462_v13 }
  0x8c   :  { %v1057_v58 = vsel %vm269_vm3, 1.0, %v1327_v6  ;;  %1193 = vmatpush3.msra.mxu1 %v462_v13 }
  0x8d   :  { %v286_v62 = vpack.c.bf16 %v1058_v57, %v1057_v58  ;;  %v227_v63 = vpop.permute.xlu1 %226  ;;  %1194 = vmatprep.subr.mxu1 %v461_v14 }
  0x8e   :  { %v224_v0 = vpop.permute.xlu0 %223  ;;  %vm233_vm4 = vcmp.eq.s32.totalorder %v227_v63, %v209_v59  ;;  %1195 = vmatpush3.msra.mxu1 %v461_v14 }
  0x8f   :  { %vm232_vm5 = vcmp.eq.s32.totalorder %v224_v0, %v208_v60  ;;  %1167 = vmatmul.mubr.msk.bf16.gmra.mxu1 %vm48_vm1, %v247_v61  ;;  %1181 = vmatmul.mubr.msk.bf16.gmra.mxu0 %vm48_vm1, %v286_v62  ;;  %v1054_v1 = vsel %vm233_vm4, 1.0, %v1327_v6 }
  0x90   :  { %1170 = vmatprep.mubr.msk.bf16.mxu1 %vm1328_vm2, %v1327_v6  ;;  %1184 = vmatprep.mubr.msk.bf16.mxu0 %vm1328_vm2, %v1327_v6  ;;  %v1053_v2 = vsel %vm232_vm5, 1.0, %v1327_v6 }
  0x91   :  { %v266_v4 = vpop.permute.xlu1 %265  ;;  %v248_v9 = vpack.c.bf16 %v1054_v1, %v1053_v2 }
  0x92   :  { %v263_v5 = vpop.permute.xlu0 %262  ;;  %vm272_vm6 = vcmp.eq.s32.totalorder %v266_v4, %v209_v59 }
  0x93   :  { %vm271_vm7 = vcmp.eq.s32.totalorder %v263_v5, %v208_v60  ;;  %v1060_v7 = vsel %vm272_vm6, 1.0, %v1327_v6 }
  0x94   :  { %v1059_v8 = vsel %vm271_vm7, 1.0, %v1327_v6 }
  0x95   :  { %v287_v10 = vpack.c.bf16 %v1060_v7, %v1059_v8  ;;  %v656_v8 = vld [vmem:[%s1653_s9] sm:$0xf] }
  0x97   :  { %1171 = vmatmul.mubr.msk.bf16.gmra.mxu1 %vm48_vm1, %v248_v9  ;;  %1185 = vmatmul.mubr.msk.bf16.gmra.mxu0 %vm48_vm1, %v287_v10  ;;  %vm676_vm1 = vcmask 1043456  }
  0x98   :  { %1222 = vmatprep.mubr.msk.bf16.mxu0 %vm1328_vm2, %v1327_v6  ;;  %1205 = vmatprep.subr.msk.mxu1 %vm676_vm1, %v656_v8  ;;  %vm657_vm2 = vcmask 31744  }
  0xcc   :  { %v1153_v15 = vpop.f32.mrf.mxu0 }
  0xcd   :  { %v169_v35 = vadd.f32 %v1153_v15, %v1042_v21 }
  0xce   :  { %v163_v16 = vpop.f32.mrf.mxu0 }
  0xcf   :  { %v164_v27 = vadd.f32 %v1042_v21, %v163_v16 }
  0xd0   :  { %v1156_v17 = vpop.f32.mrf.mxu0 }
  0xd1   :  { %v179_v51 = vadd.f32 %v1156_v17, %v1042_v21 }
  0xd2   :  { %v173_v18 = vpop.f32.mrf.mxu0 }
  0xd3   :  { %v174_v43 = vadd.f32 %v1042_v21, %v173_v18 }
  0xd4   :  { %v1159_v19 = vpop.f32.mrf.mxu0 }
  0xd5   :  { %v189_v4 = vadd.f32 %v1159_v19, %v1042_v21 }
  0xd6   :  { %v183_v20 = vpop.f32.mrf.mxu0 }
  0xd7   :  { %v184_v59 = vadd.f32 %v1042_v21, %v183_v20  ;;  %v1243_v21 = vpop.permute.xlu0 %1242 }
 0x146   :  { %v414_v23 = vpop.f32.mrf.mxu0 }
 0x147   :  { %v1539_v22 = vpop.f32.mrf.mxu1 }
 0x148   :  { %v437_v24 = vmul.f32 %v414_v23, %v1539_v22  ;;  %v1178_v26 = vpop.f32.mrf.mxu0 }
 0x149   :  { %v1164_v25 = vpop.f32.mrf.mxu1 }
 0x14a   :  { %v443_v28 = vmul.f32 0.35355338, %v437_v24  ;;  %v417_v30 = vpop.f32.mrf.mxu0 }
 0x14b   :  { %v1542_v29 = vpop.f32.mrf.mxu1 }
 0x14c   :  { %v449_v31 = vmul.f32 %v443_v28, %v164_v27  ;;  %v438_v32 = vmul.f32 %v417_v30, %v1542_v29  ;;  %v1179_v34 = vpop.f32.mrf.mxu0  ;;  %v1245_v27 = vunpack.i.h.bf16 %v1243_v21  ;;  %v1244_v28 = vunpack.i.l.bf16 %v1243_v21 }
 0x14d   :  { %v1165_v33 = vpop.f32.mrf.mxu1 }
 0x14e   :  { %455 = vst.msk [vmem:[%s1655_s11] sm:$0xff] %vm78_vm0, %v449_v31  ;;  %v444_v36 = vmul.f32 0.35355338, %v438_v32  ;;  %1196 = vmatprep.mubr.msk.f32.mxu1 %vm78_vm0, %v449_v31 }
 0x14f   :  { %v1550_v37 = vpop.f32.mrf.mxu1  ;;  %v422_v38 = vpop.f32.mrf.mxu0 }
 0x150   :  { %v450_v39 = vmul.f32 %v444_v36, %v169_v35  ;;  %v439_v40 = vmul.f32 %v422_v38, %v1550_v37  ;;  %v1248_v38 = vpop.permute.xlu1 %1247 }
 0x151   :  { %v1168_v41 = vpop.f32.mrf.mxu1  ;;  %v1182_v42 = vpop.f32.mrf.mxu0 }
 0x152   :  { %456 = vst.msk [vmem:[%s1655_s11 + $0x8] sm:$0xff] %vm78_vm0, %v450_v39  ;;  %v445_v44 = vmul.f32 0.35355338, %v439_v40  ;;  %1197 = vmatmul.mubr.msk.f32.vlgmr.msra.gmra.mxu1 %vm78_vm0, %v450_v39  ;;  %v1250_v40 = vunpack.i.h.bf16 %v1248_v38  ;;  %v1249_v41 = vunpack.i.l.bf16 %v1248_v38 }
 0x153   :  { %v1558_v45 = vpop.f32.mrf.mxu1  ;;  %v425_v46 = vpop.f32.mrf.mxu0  ;;  %1206 = vmatpush3.msk.msra.mxu1 %vm676_vm1, %v656_v8 }
 0x154   :  { %v451_v47 = vmul.f32 %v445_v44, %v174_v43  ;;  %v440_v48 = vmul.f32 %v425_v46, %v1558_v45 }
 0x155   :  { %v1169_v49 = vpop.f32.mrf.mxu1  ;;  %v1183_v50 = vpop.f32.mrf.mxu0 }
 0x156   :  { %457 = vst.msk [vmem:[%s1655_s11 + $0x10] sm:$0xff] %vm78_vm0, %v451_v47  ;;  %v446_v52 = vmul.f32 0.35355338, %v440_v48  ;;  %1199 = vmatprep.mubr.msk.f32.mxu1 %vm78_vm0, %v451_v47  ;;  %v1253_v47 = vpop.permute.xlu0 %1252 }
 0x157   :  { %v1566_v53 = vpop.f32.mrf.mxu1  ;;  %v430_v54 = vpop.f32.mrf.mxu0  ;;  %v1255_v49 = vunpack.i.h.bf16 %v1253_v47  ;;  %v1254_v50 = vunpack.i.l.bf16 %v1253_v47 }
 0x158   :  { %v452_v55 = vmul.f32 %v446_v52, %v179_v51  ;;  %v441_v56 = vmul.f32 %v430_v54, %v1566_v53 }
 0x159   :  { %v1172_v57 = vpop.f32.mrf.mxu1  ;;  %v1186_v58 = vpop.f32.mrf.mxu0 }
 0x15a   :  { %458 = vst.msk [vmem:[%s1655_s11 + $0x18] sm:$0xff] %vm78_vm0, %v452_v55  ;;  %v447_v60 = vmul.f32 0.35355338, %v441_v56  ;;  %1200 = vmatmul.mubr.msk.f32.gmra.mxu1 %vm78_vm0, %v452_v55 }
 0x15b   :  { %v1574_v61 = vpop.f32.mrf.mxu1  ;;  %v433_v62 = vpop.f32.mrf.mxu0 }
 0x15c   :  { %v453_v63 = vmul.f32 %v447_v60, %v184_v59  ;;  %v442_v0 = vmul.f32 %v433_v62, %v1574_v61 }
 0x15d   :  { %v1173_v1 = vpop.f32.mrf.mxu1  ;;  %v1187_v2 = vpop.f32.mrf.mxu0 }
 0x15e   :  { %459 = vst.msk [vmem:[%s1655_s11 + $0x20] sm:$0xff] %vm78_vm0, %v453_v63  ;;  %v448_v5 = vmul.f32 0.35355338, %v442_v0  ;;  %1202 = vmatprep.mubr.msk.f32.mxu1 %vm78_vm0, %v453_v63  ;;  %v56_v63 = vshrl.u32 %v46_v3, 7 }
 0x160   :  { %v454_v7 = vmul.f32 %v448_v5, %v189_v4  ;;  %v57_v0 = vadd.s32 8, %v56_v63  ;;  %59 = vst.msk [vmem:[#allocation4] sm:$0xff] %vm58_vm8, %v56_v63 }
 0x162   :  { %460 = vst.msk [vmem:[%s1655_s11 + $0x28] sm:$0xff] %vm78_vm0, %v454_v7  ;;  %1203 = vmatmul.mubr.msk.f32.gmra.mxu1 %vm78_vm0, %v454_v7  ;;  %s1329_s11 = smov 32  }
 0x163   :  { %60 = vst.msk [vmem:[#allocation4 + $0x8] sm:$0xff] %vm58_vm8, %v57_v0 }
 0x212   :  { %v1198_v9 = vpop.f32.mrf.mxu1 }
 0x213   :  { %v1076_v10 = vclamps-f32 %v1198_v9, 5.0 }
 0x214   :  { %v549_v11 = vpop.f32.mrf.mxu1 }
 0x215   :  { %v592_v12 = vmul.f32 1.442695, %v1076_v10  ;;  %v1075_v13 = vclamps-f32 %v549_v11, 5.0 }
 0x217   :  { %1288 = vpow2.f32 %v592_v12  ;;  %v590_v14 = vmul.f32 1.442695, %v1075_v13 }
 0x219   :  { %1290 = vpow2.f32 %v590_v14 }
 0x21a   :  { %v1201_v15 = vpop.f32.mrf.mxu1 }
 0x21b   :  { %v1078_v16 = vclamps-f32 %v1201_v15, 5.0 }
 0x21c   :  { %v559_v17 = vpop.f32.mrf.mxu1 }
 0x21d   :  { %v596_v18 = vmul.f32 1.442695, %v1078_v16  ;;  %v1077_v19 = vclamps-f32 %v559_v17, 5.0 }
 0x21f   :  { %1292 = vpow2.f32 %v596_v18  ;;  %v594_v20 = vmul.f32 1.442695, %v1077_v19 }
 0x221   :  { %1294 = vpow2.f32 %v594_v20 }
 0x222   :  { %v1204_v23 = vpop.f32.mrf.mxu1 }
 0x223   :  { %v1080_v24 = vclamps-f32 %v1204_v23, 5.0  ;;  %v1094_v23 = vld [vmem:[%s1646_s2] ss:$0 sm:$0xff] }
 0x224   :  { %v1289_v25 = vpop.eup %1288  ;;  %v569_v26 = vpop.f32.mrf.mxu1 }
 0x225   :  { %v600_v30 = vmul.f32 1.442695, %v1080_v24  ;;  %v1079_v31 = vclamps-f32 %v569_v26, 5.0  ;;  %v651_v33 = vmul.f32 %v1289_v25, %v1245_v27  ;;  %v857_v24 = vld [vmem:[#allocation4] sm:$0xff]  ;;  %v858_v25 = vld [vmem:[#allocation4 + $0x8] sm:$0xff] }
 0x226   :  { %v1291_v32 = vpop.eup %1290  ;;  %vm863_vm10 = vcmp.eq.s32.totalorder %v1094_v23, %v857_v24  ;;  %vm864_vm11 = vcmp.eq.s32.totalorder %v1094_v23, %v858_v25 }
 0x227   :  { %1296 = vpow2.f32 %v600_v30  ;;  %v598_v34 = vmul.f32 1.442695, %v1079_v31  ;;  %v650_v35 = vmul.f32 %v1291_v32, %v1244_v28 }
 0x229   :  { %1298 = vpow2.f32 %v598_v34  ;;  %1207 = vmatprep.mubr.msk.f32.mxu1 %vm657_vm2, %v650_v35  ;;  %v1281_v36 = vpack.i.bf16 %v651_v33, %v650_v35 }
 0x22a   :  { %1208 = vmatmul.mubr.msk.f32.vlgmr.msra.gmra.mxu1 %vm657_vm2, %v651_v33 }
 0x22c   :  { %v1293_v39 = vpop.eup %1292 }
 0x22d   :  { %v653_v44 = vmul.f32 %v1293_v39, %v1250_v40 }
 0x22e   :  { %v1295_v42 = vpop.eup %1294 }
 0x22f   :  { %v652_v43 = vmul.f32 %v1295_v42, %v1249_v41  ;;  %v1095_v41 = vsel %vm863_vm10, 1.0, %v1327_v6  ;;  %v1096_v42 = vsel %vm864_vm11, 1.0, %v1327_v6 }
 0x230   :  { %v869_v47 = vpack.c.bf16 %v1096_v42, %v1095_v41 }
 0x231   :  { %1210 = vmatprep.mubr.msk.f32.mxu1 %vm657_vm2, %v652_v43  ;;  %v1271_v46 = vpack.i.bf16 %v653_v44, %v652_v43 }
 0x232   :  { %1211 = vmatmul.mubr.msk.f32.gmra.mxu1 %vm657_vm2, %v653_v44 }
 0x234   :  { %v1297_v48 = vpop.eup %1296 }
 0x235   :  { %v655_v54 = vmul.f32 %v1297_v48, %v1255_v49  ;;  %v927_v48 = vld [vmem:[%s1653_s9] sm:$0xf]  ;;  %s1331_s9 = smov [#allocation5]  }
 0x236   :  { %v1299_v51 = vpop.eup %1298  ;;  %v870_v49 = vld [vmem:[#allocation2] sm:$0xff]  ;;  %s1027_s3 = sshll.u32 %s1331_s9, 4  ;;  %s1028_s3 = int_to_ptr.vmem [resolvable:$true] %s1027_s3 }
 0x237   :  { %v654_v52 = vmul.f32 %v1299_v51, %v1254_v50  ;;  %s1304_s23 = scalar_lea.vmem %s1028_s3, 256  ;;  %p1309_p1 = scmp.lt.s32.totalorder %s1028_s3, %s1028_s3 }
 0x238   :  { %p1305_p0 = scmp.ne.s32.totalorder %s1028_s3, %s1304_s23  ;;  %p1310_p2 = scmp.lt.s32.totalorder %s1304_s23, %s1304_s23 }
 0x239   :  { %1213 = vmatprep.mubr.msk.f32.mxu1 %vm657_vm2, %v654_v52  ;;  %v1256_v55 = vpack.i.bf16 %v655_v54, %v654_v52 }
 0x23a   :  { %1214 = vmatmul.mubr.msk.f32.gmra.mxu1 %vm657_vm2, %v655_v54  ;;  %v871_v54 = vld [vmem:[#allocation2 + $0x8] sm:$0xff]  ;;  %p1311_p3 = por %p1310_p2, %p1309_p1 }
 0x23c   :  { %p1312_p4 = pnand %p1311_p3, %p1305_p0 }
 0x2ea   :  { %v1209_v56 = vpop.f32.mrf.mxu1 }
 0x2ec   :  { %v746_v57 = vpop.f32.mrf.mxu1 }
 0x2f2   :  { %v1212_v58 = vpop.f32.mrf.mxu1 }
 0x2f4   :  { %v756_v59 = vpop.f32.mrf.mxu1 }
 0x2fa   :  { %v1215_v60 = vpop.f32.mrf.mxu1 }
 0x2fb   :  { %791 = vrot.lane.b32.xlu0 %v1215_v60, %s1329_s11 }
 0x2fc   :  { %v766_v62 = vpop.f32.mrf.mxu1 }
 0x2fd   :  { %789 = vrot.lane.b32.xlu1 %v766_v62, %s1329_s11 }
 0x2ff   :  { %787 = vrot.lane.b32.xlu0 %v1212_v58, %s1329_s11 }
 0x301   :  { %785 = vrot.lane.b32.xlu1 %v756_v59, %s1329_s11 }
 0x303   :  { %783 = vrot.lane.b32.xlu0 %v1209_v56, %s1329_s11 }
 0x305   :  { %781 = vrot.lane.b32.xlu1 %v746_v57, %s1329_s11 }
 0x307   :  { %1257 = vrot.lane.b32.xlu0 %v1256_v55, %s1329_s11 }
 0x30b   :  { %1272 = vrot.lane.b32.xlu0 %v1271_v46, %s1329_s11 }
 0x30f   :  { %1282 = vrot.lane.b32.xlu0 %v1281_v36, %s1329_s11 }
 0x36d   :  { %v792_v1 = vpop.permute.xlu0 %791 }
 0x36e   :  { %v804_v4 = vmul.f32 %v792_v1, %v1574_v61 }
 0x36f   :  { %v790_v2 = vpop.permute.xlu1 %789 }
 0x370   :  { %v803_v5 = vmul.f32 %v790_v2, %v1566_v53 }
 0x371   :  { %v788_v7 = vpop.permute.xlu0 %787 }
 0x372   :  { %v1261_v8 = vpack.i.bf16 %v804_v4, %v803_v5  ;;  %v802_v10 = vmul.f32 %v788_v7, %v1558_v45 }
 0x373   :  { %v786_v9 = vpop.permute.xlu1 %785 }
 0x374   :  { %v801_v11 = vmul.f32 %v786_v9, %v1550_v37  ;;  %1262 = vrot.lane.b32.xlu1 %v1261_v8, %s1330_s20 }
 0x375   :  { %v784_v3 = vpop.permute.xlu0 %783 }
 0x376   :  { %v1266_v12 = vpack.i.bf16 %v802_v10, %v801_v11  ;;  %v800_v14 = vmul.f32 %v784_v3, %v1542_v29 }
 0x377   :  { %v782_v13 = vpop.permute.xlu1 %781 }
 0x378   :  { %v799_v61 = vmul.f32 %v782_v13, %v1539_v22  ;;  %1267 = vrot.lane.b32.xlu1 %v1266_v12, %s1330_s20 }
 0x379   :  { %v1258_v45 = vpop.permute.xlu0 %1257 }
 0x37a   :  { %v1276_v37 = vpack.i.bf16 %v800_v14, %v799_v61  ;;  %v1260_v16 = vunpack.i.h.bf16 %v1258_v45  ;;  %v1259_v17 = vunpack.i.l.bf16 %v1258_v45 }
 0x37c   :  { %1277 = vrot.lane.b32.xlu1 %v1276_v37, %s1330_s20 }
 0x37d   :  { %v1273_v53 = vpop.permute.xlu0 %1272 }
 0x37e   :  { %v1275_v26 = vunpack.i.h.bf16 %v1273_v53  ;;  %v1274_v27 = vunpack.i.l.bf16 %v1273_v53 }
 0x381   :  { %v1283_v31 = vpop.permute.xlu0 %1282 }
 0x382   :  { %v1285_v36 = vunpack.i.h.bf16 %v1283_v31  ;;  %v1284_v38 = vunpack.i.l.bf16 %v1283_v31 }
 0x3e6   :  { %v1263_v15 = vpop.permute.xlu1 %1262 }
 0x3e7   :  { %v1265_v18 = vunpack.i.h.bf16 %v1263_v15  ;;  %v1264_v29 = vunpack.i.l.bf16 %v1263_v15 }
 0x3e9   :  { %v852_v22 = vsel %vm78_vm0, %v1265_v18, %v1260_v16  ;;  %v851_v19 = vsel %vm78_vm0, %v1264_v29, %v1259_v17 }
 0x3ea   :  { %v855_v20 = vpack.c.bf16 %v852_v22, %v851_v19  ;;  %v1268_v21 = vpop.permute.xlu1 %1267 }
 0x3eb   :  { %v1270_v28 = vunpack.i.h.bf16 %v1268_v21  ;;  %v1269_v30 = vunpack.i.l.bf16 %v1268_v21 }
 0x3ec   :  { %1217 = vmatpush3.bf16.msra.mxu0 %v855_v20 }
 0x3ed   :  { %v850_v32 = vsel %vm78_vm0, %v1270_v28, %v1275_v26  ;;  %v849_v33 = vsel %vm78_vm0, %v1269_v30, %v1274_v27  ;;  %1218 = vmatprep.subr.bf16.mxu0 %v1327_v6 }
 0x3ee   :  { %v854_v34 = vpack.c.bf16 %v850_v32, %v849_v33  ;;  %v1278_v35 = vpop.permute.xlu1 %1277 }
 0x3ef   :  { %v1280_v39 = vunpack.i.h.bf16 %v1278_v35  ;;  %v1279_v40 = vunpack.i.l.bf16 %v1278_v35 }
 0x3f0   :  { %1219 = vmatpush3.bf16.msra.mxu0 %v854_v34 }
 0x3f1   :  { %v848_v43 = vsel %vm78_vm0, %v1280_v39, %v1285_v36  ;;  %v847_v44 = vsel %vm78_vm0, %v1279_v40, %v1284_v38  ;;  %1220 = vmatprep.subr.bf16.mxu0 %v1327_v6 }
 0x3f2   :  { %v853_v46 = vpack.c.bf16 %v848_v43, %v847_v44 }
 0x3f4   :  { %1221 = vmatpush3.bf16.msra.mxu0 %v853_v46 }
 0x3f5   :  { %1226 = vmatprep.subr.msk.mxu0 %vm676_vm1, %v927_v48 }
 0x3f7   :  { %1223 = vmatmul.mubr.msk.bf16.vlgmr.msra.gmra.mxu0 %vm58_vm8, %v869_v47 }
 0x3f8   :  { %1227 = vmatpush3.msk.msra.mxu0 %vm676_vm1, %v927_v48 }
 0x4b7   :  { %v910_v50 = vpop.f32.mrf.mxu0 }
 0x4b8   :  { %v917_v51 = vadd.f32 %v910_v50, %v870_v49 }
 0x4b9   :  { %v1224_v52 = vpop.f32.mrf.mxu0 }
 0x4ba   :  { %920 = vst.msk [vmem:[#allocation2] sm:$0xff] %vm43_vm9, %v917_v51 }
 0x4bb   :  { %v913_v6 = vpop.f32.mrf.mxu0 }
 0x4bc   :  { %v918_v55 = vadd.f32 %v913_v6, %v871_v54 }
 0x4bd   :  { %v1225_v56 = vpop.f32.mrf.mxu0 }
 0x4be   :  { %921 = vst.msk [vmem:[#allocation2 + $0x8] sm:$0xff] %vm43_vm9, %v918_v55 }
 0x4c1   :  { %v925_v57 = vld [vmem:[#allocation2] sm:$0xff] }
 0x4c2   :  { %930 = vrot.lane.b32.xlu1 %v925_v57, %s1330_s20 }
 0x4c5   :  { %v926_v58 = vld [vmem:[#allocation2 + $0x8] sm:$0xff] }
 0x4c6   :  { %932 = vrot.lane.b32.xlu0 %v926_v58, %s1330_s20 }
 0x534   :  { %v931_v59 = vpop.permute.xlu1 %930 }
 0x535   :  { %1228 = vmatprep.mubr.msk.f32.mxu0 %vm657_vm2, %v931_v59 }
 0x538   :  { %v933_v60 = vpop.permute.xlu0 %932 }
 0x539   :  { %1229 = vmatmul.mubr.msk.f32.vlgmr.msra.gmra.mxu0 %vm657_vm2, %v933_v60 }
 0x5f9   :  { %v1230_v62 = vpop.f32.mrf.mxu0 }
 0x5fa   :  { %v1013_v63 = vadd.f32 1e-06, %v1230_v62 }
 0x5fb   :  { %v1007_v0 = vpop.f32.mrf.mxu0 }
 0x5fc   :  { %1300 = vrcp.f32 %v1013_v63  ;;  %v1008_v1 = vadd.f32 1e-06, %v1007_v0 }
 0x5fe   :  { %1302 = vrcp.f32 %v1008_v1 }
 0x609   :  { %v1301_v2 = vpop.eup %1300 }
 0x60a   :  { %v1019_v4 = vmul.f32 %v1301_v2, %v926_v58 }
 0x60b   :  { %v1303_v5 = vpop.eup %1302 }
 0x60c   :  { %v1017_v7 = vmul.f32 %v1303_v5, %v925_v57  ;;  %1021 = vst.msk [vmem:[#allocation5 + $0x8] sm:$0xff] %vm78_vm0, %v1019_v4 }
 0x60e   :  { %1020 = vst.msk [vmem:[#allocation5] sm:$0xff] %vm78_vm0, %v1017_v7 }
 0x60f   :  { %1315 = shalt.err (!%p1312_p4)
}
 0x610   :  { %s1332_s24 = smov 128   ;;  %s1333_s25 = smov 8  }
 0x611   :  { %1033 = dma.vmem_to_hbm [thread:$0]  %s1028_s3, 256, %s1654_s10, [#allocation6], %s1332_s24, %s1332_s24, %s1333_s25  }
 0x612   :  { %1324 = dma.done.wait [#allocation6], 256  }
 0x613   :  { %1325 = vsyncadd [#allocation6], 4294967040 }
 0x614   :  { %1041 = vsyncpa [#allocation6], 1 }

</bundles_post_ra>
